<compile_context>
chip_gen: v6e
topology: v6e:2x2x1
jax: 0.10.0
libtpu: 0.0.40
codegen_flags: <defaults>
</compile_context>

<pallas_src>
import jax
import jax.numpy as jnp
from jax.experimental import pallas as pl
from jax.experimental.pallas import tpu as pltpu

PRE_EMPHASIS_COEFF = 0.97  # torchaudio default


def _sum_all(x):
    # (R, C) -> (1, 1); stay 2-D (lane reduce, then sublane reduce).
    return jnp.sum(jnp.sum(x, axis=1, keepdims=True), axis=0, keepdims=True)


def _dc_loss_kernel(pred_ref, target_ref, out_ref,
                    num_acc, den_acc, carry_t, carry_d):
    i = pl.program_id(0)
    nt = pl.num_programs(0)
    c = PRE_EMPHASIS_COEFF

    @pl.when(i == 0)
    def _init():
        num_acc[...] = jnp.zeros_like(num_acc)
        den_acc[...] = jnp.zeros_like(den_acc)
        carry_t[...] = jnp.zeros_like(carry_t)   # "previous sample" = 0 at t=0
        carry_d[...] = jnp.zeros_like(carry_d)

    pred = pred_ref[...]
    target = target_ref[...]

    # ---- denominator: sum over this tile of preemphasis(target)^2 ---------
    # prev[:, t] = target[:, t-1]; column 0 wraps to target[:, -1] and is
    # fixed below with a (B,1)-wide correction using the carried sample.
    t_prev = pltpu.roll(target, shift=1, axis=1)
    t_pe = target - c * t_prev
    den_tile = _sum_all(t_pe * t_pe)

    t_first = target[:, 0:1]                 # (B, 1)
    t_last = t_prev[:, 0:1]                  # (B, 1) == target[:, -1]
    wrong0 = t_pe[:, 0:1]                    # used the wrapped sample
    right0 = t_first - c * carry_t[...]      # uses the carried previous sample
    den_fix = _sum_all(right0 * right0 - wrong0 * wrong0)
    den_acc[...] += den_tile + den_fix

    # ---- numerator: pe(mean_b(target) - mean_b(pred)) on a (1, T_TILE) row --
    diff = (jnp.mean(target, axis=0, keepdims=True)
            - jnp.mean(pred, axis=0, keepdims=True))        # (1, T_TILE)
    d_prev = pltpu.roll(diff, shift=1, axis=1)
    d_pe = diff - c * d_prev
    num_tile = _sum_all(d_pe * d_pe)

    d_first = diff[:, 0:1]                   # (1, 1)
    d_last = d_prev[:, 0:1]                  # (1, 1) == diff[:, -1]
    wrongd = d_pe[:, 0:1]
    rightd = d_first - c * carry_d[...]
    num_fix = rightd * rightd - wrongd * wrongd              # (1, 1)
    num_acc[...] += num_tile + num_fix

    # carry this tile's last sample for the next tile's boundary column
    carry_t[...] = t_last
    carry_d[...] = d_last

    @pl.when(i == nt - 1)
    def _finalize():
        bsz = jnp.float32(pred_ref.shape[0])
        # mean_T(diff_pe^2) / mean_{B,T}(target_pe^2) == num_sum * B / den_sum
        out_ref[...] = num_acc[...] * bsz / den_acc[...]


def dc_loss(pred, target, *, t_tile=None):
    """pred, target: [B, T] float32 waveforms. Returns scalar float32 loss."""
    assert pred.shape == target.shape and pred.ndim == 2
    B, T = pred.shape

    if t_tile is None:
        # Biggest lane tile (multiple of 128) that divides T; 512-2048 lanes
        # keeps the kernel near the HBM roofline while staying VMEM-safe on
        # v7x's smaller VMEM (2 inputs x 2 pipeline buffers x B x t_tile x 4B).
        t_tile = T
        for cand in (2048, 1024, 512, 256, 128):
            if T % cand == 0:
                t_tile = cand
                break
    assert T % t_tile == 0, "time length must be divisible by the tile size"
    grid = (T // t_tile,)

    out = pl.pallas_call(
        _dc_loss_kernel,
        out_shape=jax.ShapeDtypeStruct((1, 1), jnp.float32),
        grid_spec=pltpu.PrefetchScalarGridSpec(
            num_scalar_prefetch=0,
            grid=grid,
            in_specs=[
                pl.BlockSpec((B, t_tile), lambda i: (0, i)),
                pl.BlockSpec((B, t_tile), lambda i: (0, i)),
            ],
            out_specs=pl.BlockSpec((1, 1), lambda i: (0, 0)),
            scratch_shapes=[
                pltpu.VMEM((1, 1), jnp.float32),   # numerator accumulator
                pltpu.VMEM((1, 1), jnp.float32),   # denominator accumulator
                pltpu.VMEM((B, 1), jnp.float32),   # target prev-sample carry
                pltpu.VMEM((1, 1), jnp.float32),   # diff-row prev-sample carry
            ],
        ),
        compiler_params=pltpu.CompilerParams(
            dimension_semantics=("arbitrary",),    # sequential reduction w/ carries
        ),
    )(pred.astype(jnp.float32), target.astype(jnp.float32))
    return out[0, 0]


def _dc_loss_ref(pred, target):
    # Pure-JAX reference for the correctness check.
    def pe(x):
        prev = jnp.concatenate([jnp.zeros_like(x[:, :1]), x[:, :-1]], axis=1)
        return x - PRE_EMPHASIS_COEFF * prev

    p, t = pe(pred), pe(target)
    num = jnp.mean((jnp.mean(t, axis=0) - jnp.mean(p, axis=0)) ** 2)
    return num / jnp.mean(t ** 2)


if __name__ == "__main__":
    B, T = 8, 1024  # small waveform batch: 8 signals of length 1024
    key = jax.random.PRNGKey(0)
    kp, kt = jax.random.split(key)
    pred = jax.random.normal(kp, (B, T), dtype=jnp.float32)
    target = jax.random.normal(kt, (B, T), dtype=jnp.float32)

    # Multi-tile path (grid of 4): exercises the cross-tile carries.
    loss_tiled = jax.block_until_ready(dc_loss(pred, target, t_tile=256))
    # Default tile-size selection path.
    loss_auto = jax.block_until_ready(dc_loss(pred, target))
    ref = jax.block_until_ready(_dc_loss_ref(pred, target))

    assert jnp.allclose(loss_tiled, ref, rtol=1e-4, atol=1e-6), (loss_tiled, ref)
    assert jnp.allclose(loss_auto, ref, rtol=1e-4, atol=1e-6), (loss_auto, ref)
    print("KERNEL_OK")
</pallas_src>

<mosaic_0001>
module attributes {stable_mosaic.version = 11 : i64} {
  func.func @_dc_loss_kernel(%arg0: i32, %arg1: memref<8x256xf32, #tpu.memory_space<vmem>>, %arg2: memref<8x256xf32, #tpu.memory_space<vmem>>, %arg3: memref<1x1xf32, #tpu.memory_space<vmem>>, %arg4: memref<1x1xf32, #tpu.memory_space<vmem>>, %arg5: memref<1x1xf32, #tpu.memory_space<vmem>>, %arg6: memref<8x1xf32, #tpu.memory_space<vmem>>, %arg7: memref<1x1xf32, #tpu.memory_space<vmem>>) attributes {dimension_semantics = [#tpu.dimension_semantics<arbitrary>], iteration_bounds = array<i64: 4>, scalar_prefetch = 0 : i64, scratch_operands = 4 : i64, tpu.core_type = #tpu.core_type<tc>, window_params = [{transform_indices = @transform_0, window_bounds = array<i64: 8, 256>}, {transform_indices = @transform_1, window_bounds = array<i64: 8, 256>}, {pipeline_mode = #tpu.pipeline_mode<synchronous>, transform_indices = @transform_2, window_bounds = array<i64: 1, 1>}]} {
    %c0_i32 = arith.constant 0 : i32
    %0 = arith.cmpi eq, %arg0, %c0_i32 : i32
    %1 = arith.extui %0 : i1 to i32
    %c0_i32_0 = arith.constant 0 : i32
    %2 = arith.cmpi ne, %1, %c0_i32_0 : i32
    scf.if %2 {
      %cst_35 = arith.constant 0.000000e+00 : f32
      %69 = vector.broadcast %cst_35 : f32 to vector<1x1xf32>
      %c0_36 = arith.constant 0 : index
      %c0_37 = arith.constant 0 : index
      %70 = vector.load %arg4[%c0_36, %c0_37] : memref<1x1xf32, #tpu.memory_space<vmem>>, vector<1x1xf32>
      tpu.vector_store %arg4[%c0_36, %c0_37], %69 {strides = array<i32>} : memref<1x1xf32, #tpu.memory_space<vmem>>, vector<1x1xf32>,
      %cst_38 = arith.constant 0.000000e+00 : f32
      %71 = vector.broadcast %cst_38 : f32 to vector<1x1xf32>
      %c0_39 = arith.constant 0 : index
      %c0_40 = arith.constant 0 : index
      %72 = vector.load %arg5[%c0_39, %c0_40] : memref<1x1xf32, #tpu.memory_space<vmem>>, vector<1x1xf32>
      tpu.vector_store %arg5[%c0_39, %c0_40], %71 {strides = array<i32>} : memref<1x1xf32, #tpu.memory_space<vmem>>, vector<1x1xf32>,
      %cst_41 = arith.constant 0.000000e+00 : f32
      %73 = vector.broadcast %cst_41 : f32 to vector<8x1xf32>
      %c0_42 = arith.constant 0 : index
      %c0_43 = arith.constant 0 : index
      %74 = vector.load %arg6[%c0_42, %c0_43] : memref<8x1xf32, #tpu.memory_space<vmem>>, vector<8x1xf32>
      tpu.vector_store %arg6[%c0_42, %c0_43], %73 {strides = array<i32>} : memref<8x1xf32, #tpu.memory_space<vmem>>, vector<8x1xf32>,
      %cst_44 = arith.constant 0.000000e+00 : f32
      %75 = vector.broadcast %cst_44 : f32 to vector<1x1xf32>
      %c0_45 = arith.constant 0 : index
      %c0_46 = arith.constant 0 : index
      %76 = vector.load %arg7[%c0_45, %c0_46] : memref<1x1xf32, #tpu.memory_space<vmem>>, vector<1x1xf32>
      tpu.vector_store %arg7[%c0_45, %c0_46], %75 {strides = array<i32>} : memref<1x1xf32, #tpu.memory_space<vmem>>, vector<1x1xf32>,
    } else {
    }
    %c0 = arith.constant 0 : index
    %c0_1 = arith.constant 0 : index
    %3 = vector.load %arg1[%c0, %c0_1] : memref<8x256xf32, #tpu.memory_space<vmem>>, vector<8x256xf32>
    %c0_2 = arith.constant 0 : index
    %c0_3 = arith.constant 0 : index
    %4 = vector.load %arg2[%c0_2, %c0_3] : memref<8x256xf32, #tpu.memory_space<vmem>>, vector<8x256xf32>
    %c1_i32 = arith.constant 1 : i32
    %5 = tpu.dynamic_rotate %4 by %c1_i32 dim 1 : vector<8x256xf32>, i32 -> vector<8x256xf32>
    %cst = arith.constant 9.700000e-01 : f32
    %6 = vector.broadcast %cst : f32 to vector<8x256xf32>
    %7 = arith.mulf %6, %5 : vector<8x256xf32>
    %8 = arith.subf %4, %7 : vector<8x256xf32>
    %9 = arith.mulf %8, %8 : vector<8x256xf32>
    %cst_4 = arith.constant dense<0.000000e+00> : vector<8xf32>
    %10 = vector.multi_reduction <add>, %9, %cst_4 [1] : vector<8x256xf32> to vector<8xf32>
    %11 = vector.shape_cast %10 : vector<8xf32> to vector<8x1xf32>
    %cst_5 = arith.constant dense<0.000000e+00> : vector<1xf32>
    %12 = vector.multi_reduction <add>, %11, %cst_5 [0] : vector<8x1xf32> to vector<1xf32>
    %13 = vector.shape_cast %12 : vector<1xf32> to vector<1x1xf32>
    %14 = vector.extract_strided_slice %4 {offsets = [0, 0], sizes = [8, 1], strides = [1, 1]} : vector<8x256xf32> to vector<8x1xf32>
    %15 = vector.extract_strided_slice %5 {offsets = [0, 0], sizes = [8, 1], strides = [1, 1]} : vector<8x256xf32> to vector<8x1xf32>
    %16 = vector.extract_strided_slice %8 {offsets = [0, 0], sizes = [8, 1], strides = [1, 1]} : vector<8x256xf32> to vector<8x1xf32>
    %c0_6 = arith.constant 0 : index
    %c0_7 = arith.constant 0 : index
    %17 = vector.load %arg6[%c0_6, %c0_7] : memref<8x1xf32, #tpu.memory_space<vmem>>, vector<8x1xf32>
    %cst_8 = arith.constant 9.700000e-01 : f32
    %18 = vector.broadcast %cst_8 : f32 to vector<8x1xf32>
    %19 = arith.mulf %18, %17 : vector<8x1xf32>
    %20 = arith.subf %14, %19 : vector<8x1xf32>
    %21 = arith.mulf %20, %20 : vector<8x1xf32>
    %22 = arith.mulf %16, %16 : vector<8x1xf32>
    %23 = arith.subf %21, %22 : vector<8x1xf32>
    %cst_9 = arith.constant dense<0.000000e+00> : vector<8xf32>
    %24 = vector.multi_reduction <add>, %23, %cst_9 [1] : vector<8x1xf32> to vector<8xf32>
    %25 = vector.shape_cast %24 : vector<8xf32> to vector<8x1xf32>
    %cst_10 = arith.constant dense<0.000000e+00> : vector<1xf32>
    %26 = vector.multi_reduction <add>, %25, %cst_10 [0] : vector<8x1xf32> to vector<1xf32>
    %27 = vector.shape_cast %26 : vector<1xf32> to vector<1x1xf32>
    %c0_11 = arith.constant 0 : index
    %c0_12 = arith.constant 0 : index
    %28 = vector.load %arg5[%c0_11, %c0_12] : memref<1x1xf32, #tpu.memory_space<vmem>>, vector<1x1xf32>
    %29 = arith.addf %13, %27 : vector<1x1xf32>
    %30 = arith.addf %28, %29 : vector<1x1xf32>
    %c0_13 = arith.constant 0 : index
    %c0_14 = arith.constant 0 : index
    %31 = vector.load %arg5[%c0_13, %c0_14] : memref<1x1xf32, #tpu.memory_space<vmem>>, vector<1x1xf32>
    tpu.vector_store %arg5[%c0_13, %c0_14], %30 {strides = array<i32>} : memref<1x1xf32, #tpu.memory_space<vmem>>, vector<1x1xf32>,
    %cst_15 = arith.constant dense<0.000000e+00> : vector<256xf32>
    %32 = vector.multi_reduction <add>, %4, %cst_15 [0] : vector<8x256xf32> to vector<256xf32>
    %33 = vector.shape_cast %32 : vector<256xf32> to vector<1x256xf32>
    %cst_16 = arith.constant 8.000000e+00 : f32
    %34 = vector.broadcast %cst_16 : f32 to vector<1x256xf32>
    %35 = arith.divf %33, %34 : vector<1x256xf32>
    %cst_17 = arith.constant dense<0.000000e+00> : vector<256xf32>
    %36 = vector.multi_reduction <add>, %3, %cst_17 [0] : vector<8x256xf32> to vector<256xf32>
    %37 = vector.shape_cast %36 : vector<256xf32> to vector<1x256xf32>
    %cst_18 = arith.constant 8.000000e+00 : f32
    %38 = vector.broadcast %cst_18 : f32 to vector<1x256xf32>
    %39 = arith.divf %37, %38 : vector<1x256xf32>
    %40 = arith.subf %35, %39 : vector<1x256xf32>
    %c1_i32_19 = arith.constant 1 : i32
    %41 = tpu.dynamic_rotate %40 by %c1_i32_19 dim 1 : vector<1x256xf32>, i32 -> vector<1x256xf32>
    %cst_20 = arith.constant 9.700000e-01 : f32
    %42 = vector.broadcast %cst_20 : f32 to vector<1x256xf32>
    %43 = arith.mulf %42, %41 : vector<1x256xf32>
    %44 = arith.subf %40, %43 : vector<1x256xf32>
    %45 = arith.mulf %44, %44 : vector<1x256xf32>
    %cst_21 = arith.constant dense<0.000000e+00> : vector<1xf32>
    %46 = vector.multi_reduction <add>, %45, %cst_21 [1] : vector<1x256xf32> to vector<1xf32>
    %47 = vector.shape_cast %46 : vector<1xf32> to vector<1x1xf32>
    %cst_22 = arith.constant dense<0.000000e+00> : vector<1xf32>
    %48 = vector.multi_reduction <add>, %47, %cst_22 [0] : vector<1x1xf32> to vector<1xf32>
    %49 = vector.shape_cast %48 : vector<1xf32> to vector<1x1xf32>
    %50 = vector.extract_strided_slice %40 {offsets = [0, 0], sizes = [1, 1], strides = [1, 1]} : vector<1x256xf32> to vector<1x1xf32>
    %51 = vector.extract_strided_slice %41 {offsets = [0, 0], sizes = [1, 1], strides = [1, 1]} : vector<1x256xf32> to vector<1x1xf32>
    %52 = vector.extract_strided_slice %44 {offsets = [0, 0], sizes = [1, 1], strides = [1, 1]} : vector<1x256xf32> to vector<1x1xf32>
    %c0_23 = arith.constant 0 : index
    %c0_24 = arith.constant 0 : index
    %53 = vector.load %arg7[%c0_23, %c0_24] : memref<1x1xf32, #tpu.memory_space<vmem>>, vector<1x1xf32>
    %cst_25 = arith.constant 9.700000e-01 : f32
    %54 = vector.broadcast %cst_25 : f32 to vector<1x1xf32>
    %55 = arith.mulf %54, %53 : vector<1x1xf32>
    %56 = arith.subf %50, %55 : vector<1x1xf32>
    %57 = arith.mulf %56, %56 : vector<1x1xf32>
    %58 = arith.mulf %52, %52 : vector<1x1xf32>
    %59 = arith.subf %57, %58 : vector<1x1xf32>
    %c0_26 = arith.constant 0 : index
    %c0_27 = arith.constant 0 : index
    %60 = vector.load %arg4[%c0_26, %c0_27] : memref<1x1xf32, #tpu.memory_space<vmem>>, vector<1x1xf32>
    %61 = arith.addf %49, %59 : vector<1x1xf32>
    %62 = arith.addf %60, %61 : vector<1x1xf32>
    %c0_28 = arith.constant 0 : index
    %c0_29 = arith.constant 0 : index
    %63 = vector.load %arg4[%c0_28, %c0_29] : memref<1x1xf32, #tpu.memory_space<vmem>>, vector<1x1xf32>
    tpu.vector_store %arg4[%c0_28, %c0_29], %62 {strides = array<i32>} : memref<1x1xf32, #tpu.memory_space<vmem>>, vector<1x1xf32>,
    %c0_30 = arith.constant 0 : index
    %c0_31 = arith.constant 0 : index
    %64 = vector.load %arg6[%c0_30, %c0_31] : memref<8x1xf32, #tpu.memory_space<vmem>>, vector<8x1xf32>
    tpu.vector_store %arg6[%c0_30, %c0_31], %15 {strides = array<i32>} : memref<8x1xf32, #tpu.memory_space<vmem>>, vector<8x1xf32>,
    %c0_32 = arith.constant 0 : index
    %c0_33 = arith.constant 0 : index
    %65 = vector.load %arg7[%c0_32, %c0_33] : memref<1x1xf32, #tpu.memory_space<vmem>>, vector<1x1xf32>
    tpu.vector_store %arg7[%c0_32, %c0_33], %51 {strides = array<i32>} : memref<1x1xf32, #tpu.memory_space<vmem>>, vector<1x1xf32>,
    %c3_i32 = arith.constant 3 : i32
    %66 = arith.cmpi eq, %arg0, %c3_i32 : i32
    %67 = arith.extui %66 : i1 to i32
    %c0_i32_34 = arith.constant 0 : i32
    %68 = arith.cmpi ne, %67, %c0_i32_34 : i32
    scf.if %68 {
      %c0_35 = arith.constant 0 : index
      %c0_36 = arith.constant 0 : index
      %69 = vector.load %arg4[%c0_35, %c0_36] : memref<1x1xf32, #tpu.memory_space<vmem>>, vector<1x1xf32>
      %cst_37 = arith.constant 8.000000e+00 : f32
      %70 = vector.broadcast %cst_37 : f32 to vector<1x1xf32>
      %71 = arith.mulf %69, %70 : vector<1x1xf32>
      %c0_38 = arith.constant 0 : index
      %c0_39 = arith.constant 0 : index
      %72 = vector.load %arg5[%c0_38, %c0_39] : memref<1x1xf32, #tpu.memory_space<vmem>>, vector<1x1xf32>
      %73 = arith.divf %71, %72 : vector<1x1xf32>
      %c0_40 = arith.constant 0 : index
      %c0_41 = arith.constant 0 : index
      %74 = vector.load %arg3[%c0_40, %c0_41] : memref<1x1xf32, #tpu.memory_space<vmem>>, vector<1x1xf32>
      tpu.vector_store %arg3[%c0_40, %c0_41], %73 {strides = array<i32>} : memref<1x1xf32, #tpu.memory_space<vmem>>, vector<1x1xf32>,
    } else {
    }
    return
  }
  func.func @transform_0(%arg0: i32) -> (i32, i32) {
    %c0_i32 = arith.constant 0 : i32
    %c0_i32_0 = arith.constant 0 : i32
    return %c0_i32, %arg0 : i32, i32
  }
  func.func @transform_1(%arg0: i32) -> (i32, i32) {
    %c0_i32 = arith.constant 0 : i32
    %c0_i32_0 = arith.constant 0 : i32
    return %c0_i32, %arg0 : i32, i32
  }
  func.func @transform_2(%arg0: i32) -> (i32, i32) {
    %c0_i32 = arith.constant 0 : i32
    %c0_i32_0 = arith.constant 0 : i32
    %c0_i32_1 = arith.constant 0 : i32
    return %c0_i32, %c0_i32_0 : i32, i32
  }
}

</mosaic_0001>

<bundles_post_ra>
// kernel: tpu_custom_call.1
= control target key start
LH: loop header
LB: loop body
LE: loop exit
PB: predicated region body
PF: predicated region fallthrough
CT: control target
= control target key end

     0   :  { %7 = vsyncpa [#allocation7], 0  ;;  %s790_s0 = inlined_call_operand.hbm [shape: f32[8,1024], index: 0, kind: input, shape index: {}]   ;;  %s791_s1 = inlined_call_operand.hbm [shape: f32[8,1024], index: 1, kind: input, shape index: {}]   ;;  %s792_s2 = inlined_call_operand.hbm [shape: f32[1,1], index: 2, kind: output, shape index: {}]  }
   0x1   :  { %9 = vsyncpa [#allocation7 + $0x1], 0 }
   0x2   :  { %10 = vsyncpa [#allocation10], 0 }
   0x3   :  { %12 = vsyncpa [#allocation10 + $0x1], 0 }
   0x4   :  { %13 = vsyncpa [#allocation8], 0  ;;  %s615_s9 = smov 0   ;;  %s617_s10 = smov 0  }
   0x5   :  { %s619_s11 = smov 0   ;;  %s621_s12 = smov 0  }
   0x6 LB: > { %s634_s13 = sadd.s32 4294967295, %s593_s12   ;;  %s637_s14 = sadd.s32 1, %s593_s12   ;;  %s593_s12 = sphi %s621_s12, %s804_s12   ;;  %s589_s11 = sphi %s619_s11, %s803_s11   ;;  %s585_s10 = sphi %s617_s10, %s802_s10   ;;  %s581_s9 = sphi %s615_s9, %s801_s9  }
   0x7   : > { %s23_s15 = ssub.s32 %s593_s12, %s637_s14  ;;  %s26_s16 = sadd.s32 1, %s589_s11 }
   0x8   : > { %p24_p0 = scmp.eq.s32.totalorder %s23_s15, 0  ;;  %p33_p1 = scmp.ne.s32.totalorder %s589_s11, %s585_s10 }
   0x9   : > { %p34_p2 = scmp.eq.s32.totalorder %s593_s12, 0  ;;  %p39_p3 = scmp.ne.s32.totalorder %s585_s10, %s581_s9 }
   0xa   : > { %s647_s17 = scalar_select %p24_p0, %s589_s11, %s26_s16  }
   0xb   : > { %p35_p4 = por %p34_p2, %p33_p1  ;;  %p40_p5 = scmp.eq.s32.totalorder %s634_s13, 0 }
   0xc   : > { %p431_p6 = scmp.lt.s32.totalorder %s593_s12, 4  ;;  %s656_s19 = sand.u32 1, %s589_s11  }
   0xd   : > { %p651_p7 = por %p40_p5, %p39_p3  ;;  %s399_s20 = sshll.u32 %s656_s19, 4 }
   0xe   : > { %s414_s21 = sshll.u32 %s593_s12, 8  ;;  %s114_s25 = scalar_lea.vmem [#allocation6], %s399_s20 }
   0xf   : > { %s794_s18 = scalar_select %p651_p7, 1, 0 }
  0x10   : > { %s665_s24 = scalar_lea.hbm %s790_s0, %s414_s21  ;;  %s122_s26 = sshll.u32 %s114_s25, 4  ;;  %s669_s26 = int_to_ptr.vmem [resolvable:$true] %s122_s26 }
  0x11   : > { %p671_p8 = pnand %p431_p6, %p35_p4  ;;  %s111_s28 = scalar_lea.sflag [#allocation7], %s656_s19 }
  0x12   : > { %s471_s29 = scalar_lea.hbm %s665_s24, 256  ;;  %s476_s4 = scalar_lea.hbm %s790_s0, 1024 }
  0x13   : > { %p472_p11 = scmp.ne.s32.totalorder %s665_s24, %s471_s29  ;;  %p473_p12 = pneg %p671_p8 }
  0x14   : > { %p477_p1 = scmp.lt.s32.totalorder %s665_s24, %s790_s0  ;;  %p478_p2 = scmp.lt.s32.totalorder %s476_s4, %s471_s29 }
  0x15   : > { %p474_p13 = pnand %p473_p12, %p472_p11 }
  0x16   : > { %p479_p3 = por %p478_p2, %p477_p1 }
  0x17   : > { %p475_p0 = pneg %p474_p13 }
  0x19   : > { %p480_p4 = pnand %p479_p3, %p475_p0 }
  0x1b   : > { %483 = shalt.err (!%p480_p4)
}
  0x1c   : > { %s484_s7 = scalar_lea.vmem %s669_s26, 256  ;;  %s595_s8 = smov [#allocation6]  }
  0x1d   : > { %p485_p5 = scmp.ne.s32.totalorder %s669_s26, %s484_s7  ;;  %s489_s9 = sshll.u32 %s595_s8, 4  ;;  %s490_s9 = int_to_ptr.vmem [resolvable:$false] %s489_s9 }
  0x1e   : > { %s491_s15 = scalar_lea.vmem %s490_s9, 512  ;;  %p492_p13 = scmp.lt.s32.totalorder %s669_s26, %s490_s9 }
  0x1f   : > { %p487_p6 = pnand %p485_p5, %p473_p12  ;;  %p493_p9 = scmp.lt.s32.totalorder %s491_s15, %s484_s7 }
  0x21   : > { %p488_p11 = pneg %p487_p6  ;;  %p494_p10 = por %p493_p9, %p492_p13 }
  0x23   : > { %p495_p1 = pnand %p494_p10, %p488_p11 }
  0x25   : > { %498 = shalt.err (!%p495_p1)
}
  0x26   : > { %427 = dma.hbm_to_vmem [thread:$0]  (!%p671_p8), %s665_s24, 256, %s669_s26, %s111_s28  }
  0x27   : > { %p796_p0 = scmp.lt.s32.totalorder %s593_s12, 5  ;;  %p797_p2 = scmp.ge.s32.totalorder %s593_s12, 1 }
  0x28   : > { %s715_s25 = scalar_lea.hbm %s791_s1, %s414_s21  ;;  %s133_s29 = scalar_lea.vmem [#allocation9], %s399_s20 }
  0x29   : > { %p706_p3 = pnand %p797_p2, %p796_p0  ;;  %s141_s30 = sshll.u32 %s133_s29, 4  ;;  %s142_s30 = int_to_ptr.vmem [resolvable:$true] %s141_s30 }
  0x2a   : > { %s130_s24 = scalar_lea.sflag [#allocation10], %s656_s19  ;;  %s499_s26 = scalar_lea.hbm %s715_s25, 256 }
  0x2b   : > { %s798_s16 = scalar_select %p706_p3, 1, 0 }
  0x2c   : > { %p500_p9 = scmp.ne.s32.totalorder %s715_s25, %s499_s26  ;;  %s504_s3 = scalar_lea.hbm %s791_s1, 1024 }
  0x2d   : > { %p505_p5 = scmp.lt.s32.totalorder %s715_s25, %s791_s1  ;;  %p506_p6 = scmp.lt.s32.totalorder %s504_s3, %s499_s26 }
  0x2e   : > { %p502_p10 = pnand %p500_p9, %p473_p12 }
  0x2f   : > { %p507_p11 = por %p506_p6, %p505_p5 }
  0x30   : > { %p503_p4 = pneg %p502_p10 }
  0x32   : > { %p508_p13 = pnand %p507_p11, %p503_p4 }
  0x34   : > { %511 = shalt.err (!%p508_p13)
}
  0x35   : > { %s512_s20 = scalar_lea.vmem %s142_s30, 256  ;;  %s596_s19 = smov [#allocation9]  }
  0x36   : > { %p513_p1 = scmp.ne.s32.totalorder %s142_s30, %s512_s20  ;;  %s517_s5 = sshll.u32 %s596_s19, 4  ;;  %s518_s5 = int_to_ptr.vmem [resolvable:$false] %s517_s5 }
  0x37   : > { %s519_s6 = scalar_lea.vmem %s518_s5, 512  ;;  %p520_p9 = scmp.lt.s32.totalorder %s142_s30, %s518_s5 }
  0x38   : > { %p515_p0 = pnand %p513_p1, %p473_p12  ;;  %p521_p10 = scmp.lt.s32.totalorder %s519_s6, %s512_s20 }
  0x3a   : > { %p516_p2 = pneg %p515_p0  ;;  %p522_p7 = por %p521_p10, %p520_p9 }
  0x3c   : > { %p523_p3 = pnand %p522_p7, %p516_p2 }
  0x3e   : > { %526 = shalt.err (!%p523_p3)
}
  0x3f   : > { %430 = dma.hbm_to_vmem [thread:$0]  (!%p671_p8), %s715_s25, 256, %s142_s30, %s130_s24  }
  0x40   : > { %p799_p4 = scmp.ne.s32.totalorder %s798_s16, 0 }
  0x41   : > { %s152_s7 = sand.u32 (!%p799_p4), 1, %s585_s10   ;;  %p800_p12 = scmp.ne.s32.totalorder (!%p799_p4), %s794_s18, 0 }
  0x42   : > { %150 = sbr.rel (%p799_p4) target bundleno = 408 (0x198), region = 28  ;;  %s406_s8 = sshll.u32 (!%p799_p4), %s152_s7, 4 }
  0x43   : > { %s153_s9 = scalar_lea.sflag (!%p799_p4), [#allocation7], %s152_s7  ;;  %s156_s15 = scalar_lea.vmem (!%p799_p4), [#allocation6], %s406_s8 }
  0x47   : > { %568 = dma.done.wait (%p800_p12), %s153_s9, 256  }
  0x48   : > { %570 = vsyncadd (%p800_p12), %s153_s9, 4294967040  ;;  %s162_s22 = scalar_lea.sflag [#allocation10], %s152_s7  ;;  %s165_s23 = scalar_lea.vmem [#allocation9], %s406_s8 }
  0x49   : > { %572 = dma.done.wait (%p800_p12), %s162_s22, 256  }
  0x4a   : > { %574 = vsyncadd (%p800_p12), %s162_s22, 4294967040  ;;  %p408_p7 = scmp.ne.s32.totalorder %s634_s13, 0 }
  0x4c   : > { %191 = sbr.rel (%p408_p7) target bundleno = 85 (0x55), region = 40 }
  0x51   : > { %vm192_vm0 = vcmask 0   ;;  %vm195_vm1 = vcmask 7168   ;;  %v597_v0 = vmov 0.0  }
  0x52   : > { %193 = vst.msk [vmem:[#allocation2] sm:$0x1] %vm192_vm0, %v597_v0  ;;  %194 = vst.msk [vmem:[#allocation3] sm:$0x1] %vm192_vm0, %v597_v0 }
  0x53   : > { %197 = vst.msk [vmem:[#allocation5] sm:$0x1] %vm192_vm0, %v597_v0 }
  0x54   : > { %196 = vst.msk [vmem:[#allocation4] sm:$0xff] %vm195_vm1, %v597_v0 }
  0x55 PF: > { %v200_v1 = vld [vmem:[%s165_s23] sm:$0xff]  ;;  %v201_v2 = vld [vmem:[%s165_s23 + $0x8] sm:$0xff]  ;;  %s598_s27 = smov 1   ;;  %v206_v35 = vlaneseq  ;;  %vm232_vm3 = vcmask 7168   ;;  %vm243_vm4 = vcmask 0   ;;  %vm288_vm5 = vcmask 1040384  }
  0x56   : > { %v198_v3 = vld [vmem:[%s156_s15] sm:$0xff]  ;;  %202 = vrot.lane.b32.xlu0 %v200_v1, %s598_s27  ;;  %v245_v4 = vrot.slane %v200_v1, 4  ;;  %v251_v5 = vrot.slane %v201_v2, 4  ;;  %v199_v7 = vld [vmem:[%s156_s15 + $0x8] sm:$0xff]  ;;  %p409_p8 = scmp.ne.s32.totalorder %s634_s13, 3 }
  0x57   : > { %v260_v6 = vrot.slane %v198_v3, 4  ;;  %v266_v8 = vrot.slane %v199_v7, 4  ;;  %v207_v37 = vand.u32 127, %v206_v35 }
  0x58   : > { %v252_v9 = vadd.f32 %v251_v5, %v201_v2  ;;  %v246_v10 = vadd.f32 %v245_v4, %v200_v1 }
  0x59   : > { %v261_v11 = vadd.f32 %v260_v6, %v198_v3  ;;  %v267_v12 = vadd.f32 %v266_v8, %v199_v7  ;;  %vm208_vm2 = vcmp.lt.s32.totalorder %v207_v37, 1 }
  0x5a   : > { %v253_v13 = vrot.slane %v252_v9, 2  ;;  %204 = vrot.lane.b32.xlu0 %v201_v2, %s598_s27  ;;  %v247_v14 = vrot.slane %v246_v10, 2  ;;  %v295_v55 = vld [vmem:[#allocation5] sm:$0x1] }
  0x5b   : > { %v262_v15 = vrot.slane %v261_v11, 2  ;;  %v268_v16 = vrot.slane %v267_v12, 2  ;;  %v226_v36 = vld [vmem:[#allocation4] sm:$0xff] }
  0x5c   : > { %v248_v17 = vadd.f32 %v247_v14, %v246_v10  ;;  %v254_v19 = vadd.f32 %v253_v13, %v252_v9  ;;  %v227_v39 = vmul.f32 0.97, %v226_v36 }
  0x5d   : > { %v263_v18 = vadd.f32 %v262_v15, %v261_v11  ;;  %v269_v20 = vadd.f32 %v268_v16, %v267_v12  ;;  %v296_v11 = vmul.f32 0.97, %v295_v55 }
  0x5e   : > { %v249_v21 = vrot.slane %v248_v17, 1  ;;  %v255_v23 = vrot.slane %v254_v19, 1  ;;  %v228_v41 = vsub.f32 %v200_v1, %v227_v39 }
  0x5f   : > { %v264_v22 = vrot.slane %v263_v18, 1  ;;  %v270_v24 = vrot.slane %v269_v20, 1 }
  0x60   : > { %v250_v25 = vadd.f32 %v249_v21, %v248_v17  ;;  %v256_v27 = vadd.f32 %v255_v23, %v254_v19  ;;  %v229_v48 = vmul.f32 %v228_v41, %v228_v41  ;;  %v240_v19 = vld [vmem:[#allocation3] sm:$0x1] }
  0x61   : > { %v265_v26 = vadd.f32 %v264_v22, %v263_v18  ;;  %v271_v28 = vadd.f32 %v270_v24, %v269_v20  ;;  %v300_v24 = vld [vmem:[#allocation2] sm:$0x1] }
  0x62   : > { %v258_v29 = vmul.f32 0.125, %v250_v25  ;;  %v259_v31 = vmul.f32 0.125, %v256_v27 }
  0x63   : > { %v272_v30 = vmul.f32 0.125, %v265_v26  ;;  %v273_v32 = vmul.f32 0.125, %v271_v28 }
  0x65   : > { %v274_v33 = vsub.f32 %v258_v29, %v272_v30  ;;  %v275_v34 = vsub.f32 %v259_v31, %v273_v32 }
  0x67   : > { %276 = vrot.lane.b32.xlu1 %v274_v33, %s598_s27  ;;  %v297_v15 = vsub.f32 %v274_v33, %v296_v11 }
  0x69   : > { %v298_v20 = vmul.f32 %v297_v15, %v297_v15 }
  0x6b   : > { %278 = vrot.lane.b32.xlu1 %v275_v34, %s598_s27 }
  0xc8   : > { %v203_v38 = vpop.permute.xlu0 %202 }
  0xcc   : > { %v205_v40 = vpop.permute.xlu0 %204 }
  0xcd   : > { %v209_v42 = vsel %vm208_vm2, %v203_v38, %v205_v40  ;;  %v210_v43 = vsel %vm208_vm2, %v205_v40, %v203_v38 }
  0xce   : > { %v211_v44 = vmul.f32 0.97, %v210_v43  ;;  %v212_v45 = vmul.f32 0.97, %v209_v42  ;;  %304 = vst.msk [vmem:[#allocation4] sm:$0xff] %vm232_vm3, %v210_v43 }
  0xd0   : > { %v213_v46 = vsub.f32 %v200_v1, %v211_v44  ;;  %v214_v47 = vsub.f32 %v201_v2, %v212_v45 }
  0xd2   : > { %v215_v49 = vmul.f32 %v213_v46, %v213_v46  ;;  %v216_v50 = vmul.f32 %v214_v47, %v214_v47 }
  0xd4   : > { %v217_v51 = vadd.f32 %v216_v50, %v215_v49  ;;  %v230_v52 = vsub.f32 %v229_v48, %v215_v49 }
  0xd6   : > { %218 = vadd.xlane.f32.xlu0 %v217_v51  ;;  %v233_v53 = vsel %vm232_vm3, %v230_v52, 0.0 }
  0xd7   : > { %v234_v4 = vrot.slane %v233_v53, 4 }
  0xd9   : > { %v277_v54 = vpop.permute.xlu1 %276  ;;  %v235_v5 = vadd.f32 %v234_v4, %v233_v53 }
  0xdb   : > { %v236_v6 = vrot.slane %v235_v5, 2 }
  0xdd   : > { %v279_v56 = vpop.permute.xlu1 %278  ;;  %v237_v10 = vadd.f32 %v236_v6, %v235_v5 }
  0xde   : > { %v280_v57 = vsel %vm208_vm2, %v277_v54, %v279_v56  ;;  %v281_v58 = vsel %vm208_vm2, %v279_v56, %v277_v54 }
  0xdf   : > { %v282_v59 = vmul.f32 0.97, %v281_v58  ;;  %v283_v60 = vmul.f32 0.97, %v280_v57  ;;  %305 = vst.msk [vmem:[#allocation5] sm:$0x1] %vm243_vm4, %v281_v58 }
  0xe0   : > { %v238_v14 = vrot.slane %v237_v10, 1 }
  0xe1   : > { %v284_v61 = vsub.f32 %v274_v33, %v282_v59  ;;  %v285_v62 = vsub.f32 %v275_v34, %v283_v60 }
  0xe2   : > { %v239_v18 = vadd.f32 %v238_v14, %v237_v10 }
  0xe3   : > { %v286_v63 = vmul.f32 %v284_v61, %v284_v61  ;;  %v287_v0 = vmul.f32 %v285_v62, %v285_v62 }
  0xe5   : > { %v289_v1 = vsel %vm288_vm5, %v286_v63, 0.0  ;;  %v290_v2 = vsel %vm288_vm5, %v287_v0, 0.0  ;;  %v299_v23 = vsub.f32 %v298_v20, %v286_v63 }
  0xe6   : > { %v291_v3 = vadd.f32 %v290_v2, %v289_v1 }
  0xe8   : > { %292 = vadd.xlane.f32.xlu1 %v291_v3 }
 0x15f   : > { %v219_v7 = vpop.xlane.xlu0 %218 }
 0x160   : > { %v220_v8 = vrot.slane %v219_v7, 4 }
 0x162   : > { %v221_v9 = vadd.f32 %v220_v8, %v219_v7 }
 0x164   : > { %v222_v12 = vrot.slane %v221_v9, 2 }
 0x166   : > { %v223_v13 = vadd.f32 %v222_v12, %v221_v9 }
 0x168   : > { %v224_v16 = vrot.slane %v223_v13, 1 }
 0x16a   : > { %v225_v17 = vadd.f32 %v224_v16, %v223_v13 }
 0x16c   : > { %v241_v21 = vadd.f32 %v239_v18, %v225_v17 }
 0x16e   : > { %v242_v22 = vadd.f32 %v241_v21, %v240_v19 }
 0x170   : > { %244 = vst.msk [vmem:[#allocation3] sm:$0x1] %vm243_vm4, %v242_v22 }
 0x171   : > { %v293_v25 = vpop.xlane.xlu1 %292 }
 0x172   : > { %v301_v26 = vadd.f32 %v299_v23, %v293_v25  ;;  %309 = sbr.rel (%p409_p8) target bundleno = 393 (0x189), region = 44 }
 0x174   : > { %v302_v27 = vadd.f32 %v301_v26, %v300_v24 }
 0x176   : > { %303 = vst.msk [vmem:[#allocation2] sm:$0x1] %vm243_vm4, %v302_v27 }
 0x177   : > { %v312_v28 = vld [vmem:[#allocation3] sm:$0x1] }
 0x178   : > { %469 = vrcp.f32 %v312_v28 }
 0x17d   : > { %v310_v29 = vld [vmem:[#allocation2] sm:$0x1] }
 0x17e   : > { %v311_v30 = vmul.f32 8.0, %v310_v29 }
 0x185   : > { %v470_v31 = vpop.eup %469 }
 0x186   : > { %v314_v32 = vmul.f32 %v470_v31, %v311_v30 }
 0x188   : > { %315 = vst.msk [vmem:[#allocation11] sm:$0x1] %vm243_vm4, %v314_v32 }
 0x189 PF: > { %p432_p3 = scmp.eq.s32.totalorder %s634_s13, 3  ;;  %s599_s18 = smov [#allocation11]  }
 0x18a   : > { %s323_s16 = sshll.u32 %s599_s18, 4  ;;  %s324_s16 = int_to_ptr.vmem [resolvable:$true] %s323_s16 }
 0x18b   : > { %s527_s25 = scalar_lea.vmem %s324_s16, 16  ;;  %s533_s29 = scalar_lea.vmem %s324_s16, 32 }
 0x18c   : > { %p528_p5 = scmp.ne.s32.totalorder %s324_s16, %s527_s25  ;;  %p534_p13 = scmp.lt.s32.totalorder %s324_s16, %s324_s16 }
 0x18d   : > { %p535_p1 = scmp.lt.s32.totalorder %s533_s29, %s527_s25 }
 0x18e   : > { %p529_p6 = pnand %p528_p5, %p432_p3 }
 0x18f   : > { %p536_p0 = por %p535_p1, %p534_p13 }
 0x190   : > { %p530_p11 = pneg %p529_p6 }
 0x192   : > { %p537_p2 = pnand %p536_p0, %p530_p11 }
 0x194   : > { %540 = shalt.err (!%p537_p2)
}
 0x195   : > { %421 = dma.vmem_to_hbm [thread:$0]  (%p432_p3), %s324_s16, 16, %s792_s2, [#allocation8]  }
 0x196   : > { %576 = dma.done.wait (%p432_p3), [#allocation8], 16  }
 0x197   : > { %578 = vsyncadd (%p432_p3), [#allocation8], 4294967280 }
 0x198 PF: > { %p16_p9 = scmp.ge.s32.totalorder %s637_s14, 6   ;;  %s801_s9 = smov %s585_s10 }
 0x199   : > { %s802_s10 = smov %s589_s11  ;;  %s803_s11 = smov %s647_s17 }
 0x19a   : > { %s804_s12 = smov %s637_s14  ;;  %18 = sbr.rel (!%p16_p9) target bundleno = 6 (0x6), region = 86 }
 0x19f   :  { %336 = vsyncpa [#allocation7], 1 }
 0x1a0   :  { %338 = vsyncpa [#allocation7 + $0x1], 1 }
 0x1a1   :  { %339 = vsyncpa [#allocation10], 1 }
 0x1a2   :  { %341 = vsyncpa [#allocation10 + $0x1], 1 }
 0x1a3   :  { %342 = vsyncpa [#allocation8], 1 }
 0x1a4   :  { %344 = vsyncpa [#allocation8 + $0x1], 1 }

</bundles_post_ra>
